<compile_context>
chip_gen: v7x
topology: tpu7x:2x2x1
jax: 0.10.0
libtpu: 0.0.40
codegen_flags: <defaults>
</compile_context>

<pallas_src>
import functools

import jax
import jax.numpy as jnp
from jax.experimental import pallas as pl
from jax.experimental.pallas import tpu as pltpu

EPS = 1e-5
H1, H2, OUT = 64, 32, 2


# --------------------------------------------------------------------------
# Kernel: fused 3-layer MLP, batch on lanes (BN already folded into w2/b2,
# w3/b3 by the wrapper).  x_ref is (F, tb); output is (OUT, tb).
# --------------------------------------------------------------------------
def _mlp_kernel(x_ref, w1_ref, w2_ref, w3_ref, b_ref, o_ref, *, acc_dtype):
    w_dtype = w1_ref.dtype  # matmul operand dtype (bf16 or f32)

    # ----- layer1 + ReLU (BN1 folded into w2/b2) -----
    h = jnp.dot(w1_ref[...], x_ref[...], preferred_element_type=acc_dtype)
    h = jnp.maximum(h + b_ref[0:H1, :].astype(acc_dtype), 0.0)

    # ----- layer2 + ReLU (BN2 folded into w3/b3) -----
    h = jnp.dot(w2_ref[...], h.astype(w_dtype), preferred_element_type=acc_dtype)
    h = jnp.maximum(h + b_ref[H1:H1 + H2, :].astype(acc_dtype), 0.0)

    # ----- output layer + Sigmoid (f32, exact) -----
    logits = jnp.dot(w3_ref[...], h.astype(w_dtype),
                     preferred_element_type=jnp.float32)
    logits = logits + b_ref[H1 + H2:H1 + H2 + OUT, :]
    o_ref[...] = (1.0 / (1.0 + jnp.exp(-logits))).astype(o_ref.dtype)


# --------------------------------------------------------------------------
# Tiling / dtype heuristics
# --------------------------------------------------------------------------
def _choose_tiling(batch, tb=None, cap=4096):
    """tb: multiple of 128 lanes, capped.  grid: even when > 1 so v7x's two
    TensorCores split the 'parallel' batch axis evenly."""
    if tb is None:
        if batch <= 256:
            tb = 128
        else:
            half = -(-batch // 2)                 # >= 2 grid steps
            tb = min(cap, -(-half // 128) * 128)  # lane multiple
    else:
        tb = max(128, -(-int(tb) // 128) * 128)
    grid = pl.cdiv(batch, tb)
    if grid > 1 and grid % 2:
        grid += 1  # pad one extra tile: even split across v7x's 2 TCs
    return tb, grid


def _vpu_is_bf16_native():
    """v6e/v7x VALUs handle bf16 natively; v5e and older do not (perf-only
    heuristic; either choice is numerically acceptable)."""
    try:
        kind = jax.devices()[0].device_kind.lower()
    except Exception:
        return False
    return not any(t in kind for t in ("v2", "v3", "v4", "v5"))


# --------------------------------------------------------------------------
# Wrapper
# --------------------------------------------------------------------------
def flow_cytometry_forward(x, params, *, tb=None, use_bf16=True,
                           hidden_bf16=None):
    """x: [B, F] float32. params: dict of weights (see init_params)."""
    B, F = x.shape

    # ----- fold eval-mode BatchNorms into the *following* Linear (trace time)
    s1 = params["g1"] * jax.lax.rsqrt(params["v1"] + EPS)       # (1, H1)
    t1 = params["beta1"] - params["m1"] * s1                    # (1, H1)
    s2 = params["g2"] * jax.lax.rsqrt(params["v2"] + EPS)       # (1, H2)
    t2 = params["beta2"] - params["m2"] * s2                    # (1, H2)

    w1 = params["w1"]                                           # (F, H1)
    b1 = params["b1"]                                           # (1, H1)
    w2 = s1.reshape(H1, 1) * params["w2"]                       # (H1, H2)
    b2 = t1 @ params["w2"] + params["b2"]                       # (1, H2)
    w3 = s2.reshape(H2, 1) * params["w3"]                       # (H2, OUT)
    b3 = t2 @ params["w3"] + params["b3"]                       # (1, OUT)
    # Dropout(0.2): identity in eval mode.

    # ----- dtypes -----
    if hidden_bf16 is None:
        hidden_bf16 = use_bf16 and _vpu_is_bf16_native()
    op_dtype = jnp.bfloat16 if use_bf16 else jnp.float32
    acc_dtype = jnp.bfloat16 if (use_bf16 and hidden_bf16) else jnp.float32

    # Kernel weights: [out, in] so the kernel computes W @ x (batch on lanes).
    w1_k = w1.T.astype(op_dtype)                                # (H1, F)
    w2_k = w2.T.astype(op_dtype)                                # (H2, H1)
    w3_k = w3.T.astype(op_dtype)                                # (OUT, H2)
    # All biases in one replicated (98, 1) column (static slices are free).
    b_all = jnp.concatenate(
        [b1.reshape(H1), b2.reshape(H2), b3.reshape(OUT)]
    ).astype(jnp.float32).reshape(H1 + H2 + OUT, 1)

    # ----- batch tiling (batch on lanes) -----
    tb, grid = _choose_tiling(B, tb)
    Bp = grid * tb
    xt = x.T.astype(op_dtype)                                   # (F, B)
    if Bp != B:
        xt = jnp.pad(xt, ((0, 0), (0, Bp - B)))

    def rep(shape):  # small weights/biases replicated to every grid step
        return pl.BlockSpec(shape, lambda i: (0, 0))

    in_specs = [
        pl.BlockSpec((F, tb), lambda i: (0, i)),   # x: tiled over batch lanes
        rep((H1, F)), rep((H2, H1)), rep((OUT, H2)),
        rep((H1 + H2 + OUT, 1)),
    ]
    out_spec = pl.BlockSpec((OUT, tb), lambda i: (0, i))

    out = pl.pallas_call(
        functools.partial(_mlp_kernel, acc_dtype=acc_dtype),
        out_shape=jax.ShapeDtypeStruct((OUT, Bp), jnp.float32),
        grid_spec=pltpu.PrefetchScalarGridSpec(
            num_scalar_prefetch=0,
            grid=(grid,),
            in_specs=in_specs,
            out_specs=out_spec,
        ),
        compiler_params=pltpu.CompilerParams(
            dimension_semantics=("parallel",)),
    )(xt, w1_k, w2_k, w3_k, b_all)

    out = out.T                                                 # (Bp, OUT)
    return out[:B] if Bp != B else out


# --------------------------------------------------------------------------
# Synthetic parameters + pure-JAX reference
# --------------------------------------------------------------------------
def init_params(key, input_dim):
    """Deterministic synthetic parameters matching the nn.Module shapes.

    Linear weights are stored as [in, out] (transposed from PyTorch's
    [out, in]); the wrapper re-transposes for the kernel.  BatchNorm running
    mean/var are perturbed so the BN path is actually exercised.
    """
    ks = jax.random.split(key, 8)

    def lin(k, fan_in, fan_out):
        bound = 1.0 / jnp.sqrt(fan_in)
        kw, kb = jax.random.split(k)
        w = jax.random.uniform(kw, (fan_in, fan_out), jnp.float32, -bound, bound)
        b = jax.random.uniform(kb, (1, fan_out), jnp.float32, -bound, bound)
        return w, b

    w1, b1 = lin(ks[0], input_dim, H1)
    w2, b2 = lin(ks[1], H1, H2)
    w3, b3 = lin(ks[2], H2, OUT)

    return dict(
        w1=w1, b1=b1,
        g1=jnp.ones((1, H1), jnp.float32),
        beta1=jnp.zeros((1, H1), jnp.float32),
        m1=0.1 * jax.random.normal(ks[3], (1, H1), jnp.float32),
        v1=jnp.ones((1, H1), jnp.float32)
            + 0.05 * jax.random.uniform(ks[4], (1, H1), jnp.float32),
        w2=w2, b2=b2,
        g2=jnp.ones((1, H2), jnp.float32),
        beta2=jnp.zeros((1, H2), jnp.float32),
        m2=0.1 * jax.random.normal(ks[5], (1, H2), jnp.float32),
        v2=jnp.ones((1, H2), jnp.float32)
            + 0.05 * jax.random.uniform(ks[6], (1, H2), jnp.float32),
        w3=w3, b3=b3,
    )


def reference_forward(x, p):
    """Pure-JAX reference (eval-mode PyTorch semantics, unfused, f32)."""
    h = jnp.maximum(x @ p["w1"] + p["b1"], 0.0)
    h = (h - p["m1"]) / jnp.sqrt(p["v1"] + EPS) * p["g1"] + p["beta1"]
    h = jnp.maximum(h @ p["w2"] + p["b2"], 0.0)
    h = (h - p["m2"]) / jnp.sqrt(p["v2"] + EPS) * p["g2"] + p["beta2"]
    return jax.nn.sigmoid(h @ p["w3"] + p["b3"])


if __name__ == "__main__":
    key = jax.random.PRNGKey(0)
    kx, kp = jax.random.split(key)

    B, INPUT_DIM = 8, 16          # small synthetic flow-cytometry feature vectors
    x = jax.random.normal(kx, (B, INPUT_DIM), jnp.float32)
    params = init_params(kp, INPUT_DIM)
    ref = reference_forward(x, params)

    # Full-f32 path (tight check; BN fold is the only rearrangement).
    out_f32 = jax.block_until_ready(
        flow_cytometry_forward(x, params, use_bf16=False))
    assert out_f32.shape == (B, 2)
    assert jnp.allclose(out_f32, ref, atol=1e-4, rtol=1e-4), "f32 mismatch"

    # bf16 matmul operands (default fast path), looser tolerance.
    out_bf16 = jax.block_until_ready(flow_cytometry_forward(x, params))
    assert jnp.allclose(out_bf16, ref, atol=4e-2, rtol=4e-2), "bf16 mismatch"

    # Multi-step grid (2 tiles of 1024 columns; megacore path on v7x).
    B2 = 2048
    x2 = jax.random.normal(kx, (B2, INPUT_DIM), jnp.float32)
    out2 = jax.block_until_ready(flow_cytometry_forward(x2, params))
    assert out2.shape == (B2, 2)
    assert jnp.allclose(out2, reference_forward(x2, params),
                        atol=4e-2, rtol=4e-2), "multi-tile mismatch"

    # Odd grid rounded up to an even step count + lane padding exercised.
    B3 = 300
    x3 = jax.random.normal(kx, (B3, INPUT_DIM), jnp.float32)
    out3 = jax.block_until_ready(flow_cytometry_forward(x3, params, tb=128))
    assert out3.shape == (B3, 2)
    assert jnp.allclose(out3, reference_forward(x3, params),
                        atol=4e-2, rtol=4e-2), "padded/odd-grid mismatch"

    print("KERNEL_OK")
</pallas_src>

<mosaic_0001>
module attributes {stable_mosaic.version = 11 : i64} {
  func.func @_mlp_kernel(%arg0: i32, %arg1: memref<16x128xf32, #tpu.memory_space<vmem>>, %arg2: memref<64x16xf32, #tpu.memory_space<vmem>>, %arg3: memref<32x64xf32, #tpu.memory_space<vmem>>, %arg4: memref<2x32xf32, #tpu.memory_space<vmem>>, %arg5: memref<98x1xf32, #tpu.memory_space<vmem>>, %arg6: memref<2x128xf32, #tpu.memory_space<vmem>>) attributes {dimension_semantics = [#tpu.dimension_semantics<parallel>], iteration_bounds = array<i64: 1>, scalar_prefetch = 0 : i64, scratch_operands = 0 : i64, tpu.core_type = #tpu.core_type<tc>, window_params = [{transform_indices = @transform_0, window_bounds = array<i64: 16, 128>}, {pipeline_mode = #tpu.pipeline_mode<synchronous>, transform_indices = @transform_1, window_bounds = array<i64: 64, 16>}, {pipeline_mode = #tpu.pipeline_mode<synchronous>, transform_indices = @transform_2, window_bounds = array<i64: 32, 64>}, {pipeline_mode = #tpu.pipeline_mode<synchronous>, transform_indices = @transform_3, window_bounds = array<i64: 2, 32>}, {pipeline_mode = #tpu.pipeline_mode<synchronous>, transform_indices = @transform_4, window_bounds = array<i64: 98, 1>}, {transform_indices = @transform_5, window_bounds = array<i64: 2, 128>}]} {
    %c0 = arith.constant 0 : index
    %c0_0 = arith.constant 0 : index
    %0 = vector.load %arg2[%c0, %c0_0] : memref<64x16xf32, #tpu.memory_space<vmem>>, vector<64x16xf32>
    %c0_1 = arith.constant 0 : index
    %c0_2 = arith.constant 0 : index
    %1 = vector.load %arg1[%c0_1, %c0_2] : memref<16x128xf32, #tpu.memory_space<vmem>>, vector<16x128xf32>
    %cst = arith.constant dense<0.000000e+00> : vector<64x128xf32>
    %2 = tpu.matmul %0, %1, %cst {dimension_numbers = #tpu.dot_dimension_numbers<[1], [0], [0], [1], [0, 0, 1, 1], [], []>} : vector<64x16xf32>, vector<16x128xf32>, vector<64x128xf32> -> vector<64x128xf32>
    %c0_3 = arith.constant 0 : index
    %c0_4 = arith.constant 0 : index
    %3 = vector.load %arg5[%c0_3, %c0_4] : memref<98x1xf32, #tpu.memory_space<vmem>>, vector<64x1xf32>
    %4 = vector.broadcast %3 : vector<64x1xf32> to vector<64x128xf32>
    %5 = arith.addf %2, %4 : vector<64x128xf32>
    %cst_5 = arith.constant 0.000000e+00 : f32
    %6 = vector.broadcast %cst_5 : f32 to vector<64x128xf32>
    %7 = arith.maximumf %5, %6 : vector<64x128xf32>
    %c0_6 = arith.constant 0 : index
    %c0_7 = arith.constant 0 : index
    %8 = vector.load %arg3[%c0_6, %c0_7] : memref<32x64xf32, #tpu.memory_space<vmem>>, vector<32x64xf32>
    %cst_8 = arith.constant dense<0.000000e+00> : vector<32x128xf32>
    %9 = tpu.matmul %8, %7, %cst_8 {dimension_numbers = #tpu.dot_dimension_numbers<[1], [0], [0], [1], [0, 0, 1, 1], [], []>} : vector<32x64xf32>, vector<64x128xf32>, vector<32x128xf32> -> vector<32x128xf32>
    %c64 = arith.constant 64 : index
    %c0_9 = arith.constant 0 : index
    %10 = vector.load %arg5[%c64, %c0_9] : memref<98x1xf32, #tpu.memory_space<vmem>>, vector<32x1xf32>
    %11 = vector.broadcast %10 : vector<32x1xf32> to vector<32x128xf32>
    %12 = arith.addf %9, %11 : vector<32x128xf32>
    %cst_10 = arith.constant 0.000000e+00 : f32
    %13 = vector.broadcast %cst_10 : f32 to vector<32x128xf32>
    %14 = arith.maximumf %12, %13 : vector<32x128xf32>
    %c0_11 = arith.constant 0 : index
    %c0_12 = arith.constant 0 : index
    %15 = vector.load %arg4[%c0_11, %c0_12] : memref<2x32xf32, #tpu.memory_space<vmem>>, vector<2x32xf32>
    %cst_13 = arith.constant dense<0.000000e+00> : vector<2x128xf32>
    %16 = tpu.matmul %15, %14, %cst_13 {dimension_numbers = #tpu.dot_dimension_numbers<[1], [0], [0], [1], [0, 0, 1, 1], [], []>} : vector<2x32xf32>, vector<32x128xf32>, vector<2x128xf32> -> vector<2x128xf32>
    %c96 = arith.constant 96 : index
    %c0_14 = arith.constant 0 : index
    %17 = vector.load %arg5[%c96, %c0_14] : memref<98x1xf32, #tpu.memory_space<vmem>>, vector<2x1xf32>
    %18 = vector.broadcast %17 : vector<2x1xf32> to vector<2x128xf32>
    %19 = arith.addf %16, %18 : vector<2x128xf32>
    %cst_15 = arith.constant 0.000000e+00 : f32
    %20 = vector.broadcast %cst_15 : f32 to vector<2x128xf32>
    %21 = arith.subf %20, %19 : vector<2x128xf32>
    %22 = math.exp %21 : vector<2x128xf32>
    %cst_16 = arith.constant 1.000000e+00 : f32
    %23 = vector.broadcast %cst_16 : f32 to vector<2x128xf32>
    %24 = arith.addf %23, %22 : vector<2x128xf32>
    %cst_17 = arith.constant 1.000000e+00 : f32
    %25 = vector.broadcast %cst_17 : f32 to vector<2x128xf32>
    %26 = arith.divf %25, %24 : vector<2x128xf32>
    %c0_18 = arith.constant 0 : index
    %c0_19 = arith.constant 0 : index
    %27 = vector.load %arg6[%c0_18, %c0_19] : memref<2x128xf32, #tpu.memory_space<vmem>>, vector<2x128xf32>
    tpu.vector_store %arg6[%c0_18, %c0_19], %26 {strides = array<i32>} : memref<2x128xf32, #tpu.memory_space<vmem>>, vector<2x128xf32>,
    return
  }
  func.func @transform_0(%arg0: i32) -> (i32, i32) {
    %c0_i32 = arith.constant 0 : i32
    %c0_i32_0 = arith.constant 0 : i32
    return %c0_i32, %arg0 : i32, i32
  }
  func.func @transform_1(%arg0: i32) -> (i32, i32) {
    %c0_i32 = arith.constant 0 : i32
    %c0_i32_0 = arith.constant 0 : i32
    %c0_i32_1 = arith.constant 0 : i32
    return %c0_i32, %c0_i32_0 : i32, i32
  }
  func.func @transform_2(%arg0: i32) -> (i32, i32) {
    %c0_i32 = arith.constant 0 : i32
    %c0_i32_0 = arith.constant 0 : i32
    %c0_i32_1 = arith.constant 0 : i32
    return %c0_i32, %c0_i32_0 : i32, i32
  }
  func.func @transform_3(%arg0: i32) -> (i32, i32) {
    %c0_i32 = arith.constant 0 : i32
    %c0_i32_0 = arith.constant 0 : i32
    %c0_i32_1 = arith.constant 0 : i32
    return %c0_i32, %c0_i32_0 : i32, i32
  }
  func.func @transform_4(%arg0: i32) -> (i32, i32) {
    %c0_i32 = arith.constant 0 : i32
    %c0_i32_0 = arith.constant 0 : i32
    %c0_i32_1 = arith.constant 0 : i32
    return %c0_i32, %c0_i32_0 : i32, i32
  }
  func.func @transform_5(%arg0: i32) -> (i32, i32) {
    %c0_i32 = arith.constant 0 : i32
    %c0_i32_0 = arith.constant 0 : i32
    return %c0_i32, %arg0 : i32, i32
  }
}

</mosaic_0001>

<bundles_post_ra>
// kernel: tpu_custom_call.1
= control target key start
LH: loop header
LB: loop body
LE: loop exit
PB: predicated region body
PF: predicated region fallthrough
CT: control target
= control target key end

     0   :  { %vm79_vm0 = vcmask 130048   ;;  %v599_v4 = vmov 0   ;;  %s742_s0 = inlined_call_operand.vmem [shape: f32[16,128], index: 0, kind: input, shape index: {}]   ;;  %s743_s1 = inlined_call_operand.vmem [shape: f32[64,16], index: 1, kind: input, shape index: {}]   ;;  %s744_s2 = inlined_call_operand.vmem [shape: f32[32,64], index: 2, kind: input, shape index: {}]   ;;  %s745_s3 = inlined_call_operand.vmem [shape: f32[2,32], index: 3, kind: input, shape index: {}]   ;;  %s746_s4 = inlined_call_operand.vmem [shape: f32[98,1], index: 4, kind: input, shape index: {}]   ;;  %s747_s5 = inlined_call_operand.hbm [shape: f32[2,128], index: 5, kind: output, shape index: {}]  }
   0x1   :  { %v29_v0 = vld [vmem:[%s742_s0] sm:$0xff]  ;;  %v30_v1 = vld [vmem:[%s742_s0 + $0x8] sm:$0xff]  ;;  %569 = vset.pattern.permute.xlu0 %v599_v4  ;;  %570 = vset.pattern.permute.xlu1 %v599_v4  ;;  %v33_v7 = vld [vmem:[%s746_s4 + $0x10] sm:$0xff] }
   0x2   :  { %v21_v2 = vld [vmem:[%s743_s1] sm:$0xff]  ;;  %v538_v3 = vpack.c.bf16 %v30_v1, %v29_v0  ;;  %v22_v6 = vld [vmem:[%s743_s1 + $0x8] sm:$0xff]  ;;  %v23_v8 = vld [vmem:[%s743_s1 + $0x10] sm:$0xff]  ;;  %51 = vperm.xlu1 %570, %v33_v7  }
   0x3   :  { %493 = vmatprep.mubr.msk.f32.mxu0 %vm79_vm0, %v21_v2  ;;  %v31_v5 = vld [vmem:[%s746_s4] sm:$0xff]  ;;  %v32_v9 = vld [vmem:[%s746_s4 + $0x8] sm:$0xff]  ;;  %v34_v10 = vld [vmem:[%s746_s4 + $0x18] sm:$0xff] }
   0x4   :  { %539 = vmatprep.subr.bf16.mxu0 %v538_v3  ;;  %41 = vperm.xlu0 %569, %v31_v5  }
   0x5   :  { %541 = vmatpush3.bf16.msra.mxu0 %v538_v3 }
   0x8   :  { %494 = vmatmul.mubr.msk.f32.vlgmr.msra.gmra.mrb[0].mxu0 %vm79_vm0, %v22_v6 }
   0x9   :  { %10 = vsyncpa [#allocation3], 0  ;;  %496 = vmatprep.mubr.msk.f32.mxu0 %vm79_vm0, %v23_v8  ;;  %v24_v11 = vld [vmem:[%s743_s1 + $0x18] sm:$0xff]  ;;  %46 = vperm.xlu0 %569, %v32_v9   ;;  %v25_v12 = vld [vmem:[%s743_s1 + $0x20] sm:$0xff]  ;;  %vm245_vm1 = vcmask 523264   ;;  %v600_v1 = vmov 0.0|0.0  }
   0xa   :  { %v35_v13 = vld [vmem:[%s746_s4 + $0x20] sm:$0xff]  ;;  %56 = vperm.xlu1 %570, %v34_v10   ;;  %v36_v14 = vld [vmem:[%s746_s4 + $0x28] sm:$0xff]  ;;  %v27_v16 = vld [vmem:[%s743_s1 + $0x30] sm:$0xff]  ;;  %558 = vmatprep.subr.bf16.mxu0 %v600_v1  ;;  %vm601_vm2 = vmmov 0   ;;  %v602_v2 = vmov 0.0   ;;  %vm354_vm3 = vcmask 261120  }
   0xb   :  { %v26_v15 = vld [vmem:[%s743_s1 + $0x28] sm:$0xff]  ;;  %v37_v17 = vld [vmem:[%s746_s4 + $0x30] sm:$0xff]  ;;  %v38_v18 = vld [vmem:[%s746_s4 + $0x38] sm:$0xff]  ;;  %s603_s19 = smov [#allocation2]  }
   0xc   :  { %497 = vmatmul.mubr.msk.f32.gmra.mrb[2].mxu0 %vm79_vm0, %v24_v11  ;;  %v28_v19 = vld [vmem:[%s743_s1 + $0x38] sm:$0xff]  ;;  %v221_v20 = vld [vmem:[%s746_s4 + $0x40] sm:$0xff]  ;;  %v222_v21 = vld [vmem:[%s746_s4 + $0x48] sm:$0xff]  ;;  %s441_s20 = sshll.u32 %s603_s19, 4  ;;  %s442_s20 = int_to_ptr.vmem [resolvable:$true] %s441_s20 }
   0xd   :  { %499 = vmatprep.mubr.msk.f32.mxu0 %vm79_vm0, %v25_v12  ;;  %61 = vperm.xlu0 %569, %v35_v13   ;;  %v223_v22 = vld [vmem:[%s746_s4 + $0x50] sm:$0xff]  ;;  %v224_v23 = vld [vmem:[%s746_s4 + $0x58] sm:$0xff]  ;;  %v348_v24 = vld [vmem:[%s746_s4 + $0x60] sm:$0x3]  ;;  %s575_s21 = scalar_lea.vmem %s442_s20, 32  ;;  %p580_p1 = scmp.lt.s32.totalorder %s442_s20, %s442_s20 }
   0xe   :  { %66 = vperm.xlu1 %570, %v36_v14   ;;  %v217_v25 = vld [vmem:[%s744_s2] sm:$0xff]  ;;  %v218_v62 = vld [vmem:[%s744_s2 + $0x8] sm:$0xff]  ;;  %v219_v63 = vld [vmem:[%s744_s2 + $0x10] sm:$0xff]  ;;  %p576_p0 = scmp.ne.s32.totalorder %s442_s20, %s575_s21  ;;  %p581_p2 = scmp.lt.s32.totalorder %s575_s21, %s575_s21 }
   0xf   :  { %521 = vmatprep.mubr.msk.f32.mxu1 %vm245_vm1, %v217_v25  ;;  %v220_v0 = vld [vmem:[%s744_s2 + $0x18] sm:$0xff] }
  0x10   :  { %500 = vmatmul.mubr.msk.f32.gmra.mrb[4].mxu0 %vm79_vm0, %v26_v15  ;;  %p582_p3 = por %p581_p2, %p580_p1 }
  0x11   :  { %502 = vmatprep.mubr.msk.f32.mxu0 %vm79_vm0, %v27_v16  ;;  %71 = vperm.xlu0 %569, %v37_v17  }
  0x12   :  { %76 = vperm.xlu1 %570, %v38_v18   ;;  %p583_p4 = pnand %p582_p3, %p576_p0 }
  0x14   :  { %503 = vmatmul.mubr.msk.f32.gmra.mrb[6].mxu0 %vm79_vm0, %v28_v19 }
  0x15   :  { %227 = vperm.xlu0 %569, %v221_v20   ;;  %535 = vmatprep.mubr.msk.f32.mxu0 %vm601_vm2, %v602_v2 }
  0x16   :  { %232 = vperm.xlu1 %570, %v222_v21   ;;  %v347_v21 = vld [vmem:[%s745_s3] sm:$0x3] }
  0x19   :  { %237 = vperm.xlu0 %569, %v223_v22  }
  0x1a   :  { %242 = vperm.xlu1 %570, %v224_v23  }
  0x1d   :  { %351 = vperm.xlu0 %569, %v348_v24  }
  0x81   :  { %v52_v27 = vpop.permute.xlu1 %51 }
  0x83   :  { %v42_v26 = vpop.permute.xlu0 %41 }
  0x88   :  { %v47_v28 = vpop.permute.xlu0 %46 }
  0x89   :  { %v57_v29 = vpop.permute.xlu1 %56 }
  0x8c   :  { %v62_v42 = vpop.permute.xlu0 %61 }
  0x8d   :  { %v67_v39 = vpop.permute.xlu1 %66 }
  0x90   :  { %v72_v54 = vpop.permute.xlu0 %71 }
  0x91   :  { %v77_v51 = vpop.permute.xlu1 %76 }
  0x94   :  { %v228_v4 = vpop.permute.xlu0 %227 }
  0x95   :  { %v233_v3 = vpop.permute.xlu1 %232 }
  0x98   :  { %v238_v13 = vpop.permute.xlu0 %237 }
  0x99   :  { %v243_v10 = vpop.permute.xlu1 %242 }
  0x9c   :  { %v352_v22 = vpop.permute.xlu0 %351 }
  0xdb   :  { %v495_v30 = vpop.f32.mrb[0].mxu0 }
  0xdc   :  { %v176_v31 = vadd.f32 %v495_v30, %v47_v28  ;;  %v170_v32 = vpop.f32.mrb[1].mxu0 }
  0xdd   :  { %v171_v33 = vadd.f32 %v170_v32, %v42_v26 }
  0xde   :  { %v210_v34 = vmax.f32 %v176_v31, 0.0 }
  0xdf   :  { %v209_v35 = vmax.f32 %v171_v33, 0.0  ;;  %v498_v36 = vpop.f32.mrb[2].mxu0 }
  0xe0   :  { %v186_v37 = vadd.f32 %v498_v36, %v57_v29  ;;  %v180_v38 = vpop.f32.mrb[3].mxu0 }
  0xe1   :  { %v181_v40 = vadd.f32 %v180_v38, %v52_v27  ;;  %v542_v41 = vpack.c.bf16 %v210_v34, %v209_v35 }
  0xe2   :  { %v212_v43 = vmax.f32 %v186_v37, 0.0 }
  0xe3   :  { %v211_v44 = vmax.f32 %v181_v40, 0.0  ;;  %v501_v45 = vpop.f32.mrb[4].mxu0  ;;  %543 = vmatprep.subr.bf16.mxu1 %v542_v41 }
  0xe4   :  { %v196_v46 = vadd.f32 %v501_v45, %v67_v39  ;;  %v190_v47 = vpop.f32.mrb[5].mxu0  ;;  %545 = vmatpush3.bf16.msra.mxu1 %v542_v41 }
  0xe5   :  { %v546_v48 = vpack.c.bf16 %v212_v43, %v211_v44  ;;  %v191_v49 = vadd.f32 %v190_v47, %v62_v42 }
  0xe6   :  { %v214_v50 = vmax.f32 %v196_v46, 0.0 }
  0xe7   :  { %v213_v52 = vmax.f32 %v191_v49, 0.0  ;;  %v504_v53 = vpop.f32.mrb[6].mxu0  ;;  %547 = vmatprep.subr.bf16.mxu1 %v546_v48 }
  0xe8   :  { %v206_v55 = vadd.f32 %v504_v53, %v77_v51  ;;  %v200_v56 = vpop.f32.mrb[7].mxu0  ;;  %549 = vmatpush3.bf16.msra.mxu1 %v546_v48 }
  0xe9   :  { %v550_v57 = vpack.c.bf16 %v214_v50, %v213_v52  ;;  %v201_v58 = vadd.f32 %v200_v56, %v72_v54 }
  0xea   :  { %v216_v59 = vmax.f32 %v206_v55, 0.0 }
  0xeb   :  { %v215_v60 = vmax.f32 %v201_v58, 0.0  ;;  %551 = vmatprep.subr.bf16.mxu1 %v550_v57 }
  0xec   :  { %553 = vmatpush3.bf16.msra.mxu1 %v550_v57 }
  0xed   :  { %v554_v61 = vpack.c.bf16 %v216_v59, %v215_v60 }
  0xef   :  { %555 = vmatprep.subr.bf16.mxu1 %v554_v61 }
  0xf0   :  { %557 = vmatpush3.bf16.msra.mxu1 %v554_v61 }
  0xf3   :  { %522 = vmatmul.mubr.msk.f32.vlgmr.msra.gmra.mrb[0].mxu1 %vm245_vm1, %v218_v62 }
  0xf4   :  { %524 = vmatprep.mubr.msk.f32.mxu1 %vm245_vm1, %v219_v63 }
  0xf7   :  { %525 = vmatmul.mubr.msk.f32.gmra.mrb[2].mxu1 %vm245_vm1, %v220_v0 }
 0x1c6   :  { %v523_v5 = vpop.f32.mrb[0].mxu1 }
 0x1c7   :  { %v330_v6 = vadd.f32 %v523_v5, %v233_v3  ;;  %v324_v7 = vpop.f32.mrb[1].mxu1 }
 0x1c8   :  { %v325_v8 = vadd.f32 %v324_v7, %v228_v4 }
 0x1c9   :  { %v344_v9 = vmax.f32 %v330_v6, 0.0 }
 0x1ca   :  { %v343_v11 = vmax.f32 %v325_v8, 0.0  ;;  %v526_v12 = vpop.f32.mrb[2].mxu1 }
 0x1cb   :  { %v340_v14 = vadd.f32 %v526_v12, %v243_v10  ;;  %v334_v15 = vpop.f32.mrb[3].mxu1 }
 0x1cc   :  { %v559_v16 = vpack.c.bf16 %v344_v9, %v343_v11  ;;  %v335_v17 = vadd.f32 %v334_v15, %v238_v13 }
 0x1cd   :  { %v346_v18 = vmax.f32 %v340_v14, 0.0 }
 0x1ce   :  { %v345_v19 = vmax.f32 %v335_v17, 0.0  ;;  %560 = vmatpush3.bf16.msra.mxu0 %v559_v16 }
 0x1cf   :  { %561 = vmatprep.subr.bf16.mxu0 %v600_v1 }
 0x1d0   :  { %v562_v20 = vpack.c.bf16 %v346_v18, %v345_v19 }
 0x1d2   :  { %563 = vmatpush3.bf16.msra.mxu0 %v562_v20 }
 0x1d5   :  { %536 = vmatmul.mubr.msk.f32.vlgmr.msra.gmra.mrb[8].mxu0 %vm354_vm3, %v347_v21 }
 0x2a8   :  { %v424_v23 = vpop.f32.mrb[8].mxu0 }
 0x2a9   :  { %v425_v24 = vadd.f32 %v424_v23, %v352_v22  ;;  %v537_v25 = vpop.f32.mrb[9].mxu0 }
 0x2ab   :  { %v428_v26 = vsub.f32 0.0, %v425_v24 }
 0x2ad   :  { %v429_v27 = vmul.f32 1.442695, %v428_v26 }
 0x2af   :  { %571 = vpow2.f32 %v429_v27 }
 0x2b9   :  { %v572_v28 = vpop.eup %571 }
 0x2ba   :  { %v431_v29 = vadd.f32 1.0, %v572_v28 }
 0x2bc   :  { %573 = vrcp.f32 %v431_v29 }
 0x2c6   :  { %v574_v30 = vpop.eup %573 }
 0x2c7   :  { %434 = vst [vmem:[#allocation2] sm:$0x3] %v574_v30 }
 0x2c8   :  { %586 = shalt.err (!%p583_p4)
}
 0x2c9   :  { %s587_s23 = scalar_lea.hbm %s747_s5, 32 }
 0x2ca   :  { %p588_p5 = scmp.ne.s32.totalorder %s747_s5, %s587_s23  ;;  %p591_p6 = scmp.lt.u32.totalorder %s587_s23, %s747_s5 }
 0x2cc   :  { %p593_p7 = pnand %p591_p6, %p588_p5 }
 0x2ce   :  { %596 = shalt.err (!%p593_p7)
}
 0x2cf   :  { %444 = dma.vmem_to_hbm [thread:$0]  %s442_s20, 32, %s747_s5, [#allocation3]  }
 0x2d0   :  { %597 = dma.done.wait [#allocation3], 32  }
 0x2d1   :  { %598 = vsyncadd [#allocation3], 4294967264 }
 0x2d2   :  { %448 = vsyncpa [#allocation3], 1 }

</bundles_post_ra>
